<compile_context>
chip_gen: v7x
topology: tpu7x:2x2x1
jax: 0.10.0
libtpu: 0.0.40
codegen_flags: <defaults>
</compile_context>

<pallas_src>
import numpy as np
import jax
import jax.numpy as jnp
from jax.experimental import pallas as pl
from jax.experimental.pallas import tpu as pltpu


# ----------------------------------------------------------------------------
# Fused kernel factory (shapes closed over as Python ints).
# Spatial planes of height H2 are carried parity-split: even rows / odd rows,
# each (H, W2*C) with rows on sublanes and pixel-major channels on lanes.
# ----------------------------------------------------------------------------
def make_fused_kernel(H, W, Cin, Cout, Cbr):
    H2, W2 = 2 * H, 2 * W
    Lout = W2 * Cout  # lane width of an output-channel plane row

    def kernel(x_ref, br_ref, wup_ref, bup_ref, w1_ref, b1_ref, w2_ref, b2_ref,
               o_ref):
        f32 = jnp.float32

        def shifted_planes(E, O):
            # Row-shifted stacked planes for the 3 vertical taps (ky = 0, 1, 2)
            # of a padding=1 conv.  Stacked layout: rows [0:H) drive EVEN output
            # rows, rows [H:2H) drive ODD output rows.  Pure row concats.
            z = jnp.zeros((1, E.shape[1]), f32)
            s0 = jnp.concatenate([z, O[:-1], E], axis=0)   # reads full-plane row r-1
            s1 = jnp.concatenate([E, O], axis=0)           # reads row r
            s2 = jnp.concatenate([O, E[1:], z], axis=0)    # reads row r+1
            return (s0, s1, s2)

        def conv3x3(E, O, w_ref, b_ref):
            # 3x3 conv, padding=1: the kx taps and the W zero-halo are folded
            # into banded (K, W2*Cout) weights -> ONE matmul per vertical tap.
            acc = jnp.zeros((H2, Lout), f32)
            for ky, s in enumerate(shifted_planes(E, O)):
                acc = acc + jnp.dot(s, w_ref[ky], preferred_element_type=f32)
            return acc + b_ref[...]

        # 1) ConvTranspose2d(k=2, s=2): one matmul per output-row parity.  The
        #    stride-2 pixel interleave is pre-folded into the weight columns.
        x = x_ref[0]                                        # (H, W*Cin)
        bup = bup_ref[...]                                  # (1, Lout)
        up_E = jnp.dot(x, wup_ref[0], preferred_element_type=jnp.float32) + bup
        up_O = jnp.dot(x, wup_ref[1], preferred_element_type=jnp.float32) + bup

        # 2) Center-cropped bridge, parity-split by the wrapper.
        br_E = br_ref[0, 0]                                 # (H, W2*Cbr)
        br_O = br_ref[0, 1]

        # 3) conv1 + ReLU over concat([up, bridge], channel).  The concat is one
        #    lane concat per parity; the weight is K-stacked [up-block ; bridge-block].
        cat_E = jnp.concatenate([up_E, br_E], axis=1)       # (H, Lout + W2*Cbr)
        cat_O = jnp.concatenate([up_O, br_O], axis=1)
        h1 = jnp.maximum(conv3x3(cat_E, cat_O, w1_ref, b1_ref), 0.0)

        # 4) conv2 + ReLU.
        h2 = jnp.maximum(conv3x3(h1[:H], h1[H:], w2_ref, b2_ref), 0.0)

        # 5) Lane-dense store: row i holds [even-row i | odd-row i] = 2*W2*Cout
        #    = 128 lanes -> unmasked vector stores; row-major order equals NHWC.
        o_ref[0] = jnp.concatenate([h2[:H], h2[H:]], axis=1)

    return kernel


# ----------------------------------------------------------------------------
# Wrapper: layout prep (tiny XLA ops on inputs/weights) + single pallas_call.
# ----------------------------------------------------------------------------
def unet_up_block_forward(params, x_nchw, bridge_nchw):
    f32 = jnp.float32
    N, Cin, H, W = x_nchw.shape
    Cbr = bridge_nchw.shape[1]
    Cout = params["up_w"].shape[1]
    H2, W2 = 2 * H, 2 * W
    Lout = W2 * Cout

    # --- activations: NCHW (PyTorch convention) -> kernel layouts (small tensors) ---
    x2 = jnp.transpose(x_nchw, (0, 2, 3, 1)).reshape(N, H, W * Cin)

    Hb, Wb = bridge_nchw.shape[2:]
    dy, dx = (Hb - H2) // 2, (Wb - W2) // 2
    br = bridge_nchw[:, :, dy:dy + H2, dx:dx + W2]           # center crop
    br = jnp.transpose(br, (0, 2, 3, 1)).reshape(N, H, 2, W2 * Cbr)
    br = jnp.transpose(br, (0, 2, 1, 3))                     # (N, 2, H, W2*Cbr) parity-split

    # --- upconv weight: fold pixel structure + stride-2 interleave into matmul columns ---
    eyeW = jnp.eye(W, dtype=f32)
    wub = jnp.transpose(params["up_w"], (0, 2, 3, 1))        # (Cin, a, b, Cout)
    wup_bd = jnp.stack(
        [jnp.einsum("jJ,cbo->jcJbo", eyeW, wub[:, a]).reshape(W * Cin, Lout)
         for a in (0, 1)], axis=0)                           # (2, W*Cin, Lout)
    bup_row = jnp.tile(params["up_b"], W2).reshape(1, Lout)

    # --- conv weights: fold the 3 kx taps + W halo into a banded (W2*C, W2*Cout)
    #     weight per vertical tap ky (tri-diagonal in pixel blocks). ---
    def conv_band(w_hwio):                                   # (3,3,C,Co) -> (3, W2*C, W2*Co)
        C, Co = w_hwio.shape[2], w_hwio.shape[3]
        mats = []
        for ky in range(3):
            m = jnp.zeros((W2, C, W2, Co), f32)
            for kx in range(3):
                band = jnp.eye(W2, k=1 - kx, dtype=f32)      # j_out = j_in - (kx-1)
                m = m + jnp.einsum("pq,co->pcqo", band, w_hwio[ky, kx])
            mats.append(m.reshape(W2 * C, W2 * Co))
        return jnp.stack(mats, axis=0)

    # conv1 weight: K-stack [up-channel block ; bridge-channel block] to match the
    # in-kernel lane concat [up-plane | bridge-plane].
    w1 = jnp.concatenate([conv_band(params["c1_w"][:, :, :Cout, :]),
                          conv_band(params["c1_w"][:, :, Cout:, :])], axis=1)
    w2 = conv_band(params["c2_w"])
    b1_row = jnp.tile(params["c1_b"], W2).reshape(1, Lout)
    b2_row = jnp.tile(params["c2_b"], W2).reshape(1, Lout)

    kernel = make_fused_kernel(H, W, Cin, Cout, Cbr)
    K1 = W2 * (Cout + Cbr)

    out = pl.pallas_call(
        kernel,
        out_shape=jax.ShapeDtypeStruct((N, H, 2 * Lout), f32),
        grid=(N,),
        in_specs=[
            pl.BlockSpec((1, H, W * Cin), lambda n: (n, 0, 0)),
            pl.BlockSpec((1, 2, H, W2 * Cbr), lambda n: (n, 0, 0, 0)),
            pl.BlockSpec((2, W * Cin, Lout), lambda n: (0, 0, 0)),
            pl.BlockSpec((1, Lout), lambda n: (0, 0)),
            pl.BlockSpec((3, K1, Lout), lambda n: (0, 0, 0)),
            pl.BlockSpec((1, Lout), lambda n: (0, 0)),
            pl.BlockSpec((3, Lout, Lout), lambda n: (0, 0, 0)),
            pl.BlockSpec((1, Lout), lambda n: (0, 0)),
        ],
        out_specs=pl.BlockSpec((1, H, 2 * Lout), lambda n: (n, 0, 0)),
        compiler_params=pltpu.CompilerParams(dimension_semantics=("parallel",)),
    )(x2, br, wup_bd, bup_row, w1, b1_row, w2, b2_row)

    # (N, H2/2, [even-row | odd-row]) is row-major-identical to NHWC -> pure reshape.
    out = out.reshape(N, H2, W2, Cout)
    return jnp.transpose(out, (0, 3, 1, 2))                  # back to PyTorch NCHW


# ----------------------------------------------------------------------------
# Pure-JAX reference (independent of the Pallas kernel) for validation.
# ----------------------------------------------------------------------------
def center_crop_nhwc(layer, target_hw):
    _, h, w, _ = layer.shape
    dy = (h - target_hw[0]) // 2
    dx = (w - target_hw[1]) // 2
    return layer[:, dy:dy + target_hw[0], dx:dx + target_hw[1], :]


def reference_forward(params, x_nchw, bridge_nchw):
    x = jnp.transpose(x_nchw, (0, 2, 3, 1))
    bridge = jnp.transpose(bridge_nchw, (0, 2, 3, 1))
    N, H, W, Cin = x.shape
    Wt = params["up_w"]                                      # (Cin, Cout, 2, 2)
    Cout = Wt.shape[1]

    t = jnp.einsum("nijc,coab->niajbo", x, Wt)               # (N, H, 2, W, 2, Cout)
    up = t.reshape(N, 2 * H, 2 * W, Cout) + params["up_b"]

    crop = center_crop_nhwc(bridge, up.shape[1:3])
    cat = jnp.concatenate([up, crop], axis=-1)

    dn = ("NHWC", "HWIO", "NHWC")
    h = jax.lax.conv_general_dilated(cat, params["c1_w"], (1, 1),
                                     [(1, 1), (1, 1)], dimension_numbers=dn)
    h = jnp.maximum(h + params["c1_b"], 0.0)
    h = jax.lax.conv_general_dilated(h, params["c2_w"], (1, 1),
                                     [(1, 1), (1, 1)], dimension_numbers=dn)
    h = jnp.maximum(h + params["c2_b"], 0.0)
    return jnp.transpose(h, (0, 3, 1, 2))


if __name__ == "__main__":
    # Module config: in_size=8, out_size=4, up_mode='upconv', padding=True, batch_norm=False.
    N, in_size, out_size = 2, 8, 4
    Hx, Wx = 8, 8            # x spatial   -> up is 16x16
    Hb, Wb = 18, 18          # bridge spatial (center-cropped to 16x16)

    key = jax.random.PRNGKey(0)
    ks = jax.random.split(key, 8)

    params = {
        # ConvTranspose2d weight: (in_channels, out_channels, 2, 2)
        "up_w": jax.random.normal(ks[0], (in_size, out_size, 2, 2), jnp.float32) * 0.1,
        "up_b": jax.random.normal(ks[1], (out_size,), jnp.float32) * 0.1,
        # Conv2d 1: in = in_size (= out_size from up + out_size from bridge), out = out_size (HWIO)
        "c1_w": jax.random.normal(ks[2], (3, 3, in_size, out_size), jnp.float32) * 0.1,
        "c1_b": jax.random.normal(ks[3], (out_size,), jnp.float32) * 0.1,
        # Conv2d 2: out_size -> out_size (HWIO)
        "c2_w": jax.random.normal(ks[4], (3, 3, out_size, out_size), jnp.float32) * 0.1,
        "c2_b": jax.random.normal(ks[5], (out_size,), jnp.float32) * 0.1,
    }

    # Example inputs in PyTorch NCHW convention.
    x = jax.random.normal(ks[6], (N, in_size, Hx, Wx), jnp.float32)
    bridge = jax.random.normal(ks[7], (N, out_size, Hb, Wb), jnp.float32)

    fwd = jax.jit(unet_up_block_forward)
    out = jax.block_until_ready(fwd(params, x, bridge))

    ref = jax.block_until_ready(jax.jit(reference_forward)(params, x, bridge))
    np.testing.assert_allclose(np.asarray(out), np.asarray(ref),
                               rtol=1e-4, atol=1e-5)
    assert out.shape == (N, out_size, 2 * Hx, 2 * Wx)

    print("KERNEL_OK")
</pallas_src>

<mosaic_0001>
module attributes {stable_mosaic.version = 11 : i64} {
  func.func @kernel(%arg0: i32, %arg1: memref<1x8x64xf32, #tpu.memory_space<vmem>>, %arg2: memref<1x2x8x64xf32, #tpu.memory_space<vmem>>, %arg3: memref<2x64x64xf32, #tpu.memory_space<vmem>>, %arg4: memref<1x64xf32, #tpu.memory_space<vmem>>, %arg5: memref<3x128x64xf32, #tpu.memory_space<vmem>>, %arg6: memref<1x64xf32, #tpu.memory_space<vmem>>, %arg7: memref<3x64x64xf32, #tpu.memory_space<vmem>>, %arg8: memref<1x64xf32, #tpu.memory_space<vmem>>, %arg9: memref<1x8x128xf32, #tpu.memory_space<vmem>>) attributes {dimension_semantics = [#tpu.dimension_semantics<parallel>], iteration_bounds = array<i64: 2>, scalar_prefetch = 0 : i64, scratch_operands = 0 : i64, tpu.core_type = #tpu.core_type<tc>, window_params = [{transform_indices = @transform_0, window_bounds = array<i64: 1, 8, 64>}, {transform_indices = @transform_1, window_bounds = array<i64: 1, 2, 8, 64>}, {pipeline_mode = #tpu.pipeline_mode<synchronous>, transform_indices = @transform_2, window_bounds = array<i64: 2, 64, 64>}, {pipeline_mode = #tpu.pipeline_mode<synchronous>, transform_indices = @transform_3, window_bounds = array<i64: 1, 64>}, {pipeline_mode = #tpu.pipeline_mode<synchronous>, transform_indices = @transform_4, window_bounds = array<i64: 3, 128, 64>}, {pipeline_mode = #tpu.pipeline_mode<synchronous>, transform_indices = @transform_5, window_bounds = array<i64: 1, 64>}, {pipeline_mode = #tpu.pipeline_mode<synchronous>, transform_indices = @transform_6, window_bounds = array<i64: 3, 64, 64>}, {pipeline_mode = #tpu.pipeline_mode<synchronous>, transform_indices = @transform_7, window_bounds = array<i64: 1, 64>}, {transform_indices = @transform_8, window_bounds = array<i64: 1, 8, 128>}]} {
    %c0 = arith.constant 0 : index
    %c0_0 = arith.constant 0 : index
    %c0_1 = arith.constant 0 : index
    %0 = vector.load %arg1[%c0, %c0_0, %c0_1] : memref<1x8x64xf32, #tpu.memory_space<vmem>>, vector<1x8x64xf32>
    %1 = vector.shape_cast %0 : vector<1x8x64xf32> to vector<8x64xf32>
    %c0_2 = arith.constant 0 : index
    %c0_3 = arith.constant 0 : index
    %2 = vector.load %arg4[%c0_2, %c0_3] : memref<1x64xf32, #tpu.memory_space<vmem>>, vector<1x64xf32>
    %c0_4 = arith.constant 0 : index
    %c0_5 = arith.constant 0 : index
    %c0_6 = arith.constant 0 : index
    %3 = vector.load %arg3[%c0_4, %c0_5, %c0_6] : memref<2x64x64xf32, #tpu.memory_space<vmem>>, vector<1x64x64xf32>
    %4 = vector.shape_cast %3 : vector<1x64x64xf32> to vector<64x64xf32>
    %cst = arith.constant dense<0.000000e+00> : vector<8x64xf32>
    %5 = tpu.matmul %1, %4, %cst {dimension_numbers = #tpu.dot_dimension_numbers<[1], [0], [0], [1], [0, 0, 1, 1], [], []>} : vector<8x64xf32>, vector<64x64xf32>, vector<8x64xf32> -> vector<8x64xf32>
    %6 = vector.broadcast %2 : vector<1x64xf32> to vector<8x64xf32>
    %7 = arith.addf %5, %6 : vector<8x64xf32>
    %c1 = arith.constant 1 : index
    %c0_7 = arith.constant 0 : index
    %c0_8 = arith.constant 0 : index
    %8 = vector.load %arg3[%c1, %c0_7, %c0_8] : memref<2x64x64xf32, #tpu.memory_space<vmem>>, vector<1x64x64xf32>
    %9 = vector.shape_cast %8 : vector<1x64x64xf32> to vector<64x64xf32>
    %cst_9 = arith.constant dense<0.000000e+00> : vector<8x64xf32>
    %10 = tpu.matmul %1, %9, %cst_9 {dimension_numbers = #tpu.dot_dimension_numbers<[1], [0], [0], [1], [0, 0, 1, 1], [], []>} : vector<8x64xf32>, vector<64x64xf32>, vector<8x64xf32> -> vector<8x64xf32>
    %11 = vector.broadcast %2 : vector<1x64xf32> to vector<8x64xf32>
    %12 = arith.addf %10, %11 : vector<8x64xf32>
    %c0_10 = arith.constant 0 : index
    %c0_11 = arith.constant 0 : index
    %c0_12 = arith.constant 0 : index
    %c0_13 = arith.constant 0 : index
    %13 = vector.load %arg2[%c0_10, %c0_11, %c0_12, %c0_13] : memref<1x2x8x64xf32, #tpu.memory_space<vmem>>, vector<1x1x8x64xf32>
    %14 = vector.shape_cast %13 : vector<1x1x8x64xf32> to vector<8x64xf32>
    %c0_14 = arith.constant 0 : index
    %c1_15 = arith.constant 1 : index
    %c0_16 = arith.constant 0 : index
    %c0_17 = arith.constant 0 : index
    %15 = vector.load %arg2[%c0_14, %c1_15, %c0_16, %c0_17] : memref<1x2x8x64xf32, #tpu.memory_space<vmem>>, vector<1x1x8x64xf32>
    %16 = vector.shape_cast %15 : vector<1x1x8x64xf32> to vector<8x64xf32>
    %17 = tpu.concatenate %7, %14 in 1 : vector<8x64xf32>, vector<8x64xf32> -> vector<8x128xf32>
    %18 = tpu.concatenate %12, %16 in 1 : vector<8x64xf32>, vector<8x64xf32> -> vector<8x128xf32>
    %cst_18 = arith.constant 0.000000e+00 : f32
    %19 = vector.broadcast %cst_18 : f32 to vector<16x64xf32>
    %cst_19 = arith.constant 0.000000e+00 : f32
    %20 = vector.broadcast %cst_19 : f32 to vector<1x128xf32>
    %21 = vector.extract_strided_slice %18 {offsets = [0, 0], sizes = [7, 128], strides = [1, 1]} : vector<8x128xf32> to vector<7x128xf32>
    %22 = tpu.concatenate %20, %21, %17 in 0 : vector<1x128xf32>, vector<7x128xf32>, vector<8x128xf32> -> vector<16x128xf32>
    %23 = tpu.concatenate %17, %18 in 0 : vector<8x128xf32>, vector<8x128xf32> -> vector<16x128xf32>
    %24 = vector.extract_strided_slice %17 {offsets = [1, 0], sizes = [7, 128], strides = [1, 1]} : vector<8x128xf32> to vector<7x128xf32>
    %25 = tpu.concatenate %18, %24, %20 in 0 : vector<8x128xf32>, vector<7x128xf32>, vector<1x128xf32> -> vector<16x128xf32>
    %c0_20 = arith.constant 0 : index
    %c0_21 = arith.constant 0 : index
    %c0_22 = arith.constant 0 : index
    %26 = vector.load %arg5[%c0_20, %c0_21, %c0_22] : memref<3x128x64xf32, #tpu.memory_space<vmem>>, vector<1x128x64xf32>
    %27 = vector.shape_cast %26 : vector<1x128x64xf32> to vector<128x64xf32>
    %cst_23 = arith.constant dense<0.000000e+00> : vector<16x64xf32>
    %28 = tpu.matmul %22, %27, %cst_23 {dimension_numbers = #tpu.dot_dimension_numbers<[1], [0], [0], [1], [0, 0, 1, 1], [], []>} : vector<16x128xf32>, vector<128x64xf32>, vector<16x64xf32> -> vector<16x64xf32>
    %29 = arith.addf %19, %28 : vector<16x64xf32>
    %c1_24 = arith.constant 1 : index
    %c0_25 = arith.constant 0 : index
    %c0_26 = arith.constant 0 : index
    %30 = vector.load %arg5[%c1_24, %c0_25, %c0_26] : memref<3x128x64xf32, #tpu.memory_space<vmem>>, vector<1x128x64xf32>
    %31 = vector.shape_cast %30 : vector<1x128x64xf32> to vector<128x64xf32>
    %cst_27 = arith.constant dense<0.000000e+00> : vector<16x64xf32>
    %32 = tpu.matmul %23, %31, %cst_27 {dimension_numbers = #tpu.dot_dimension_numbers<[1], [0], [0], [1], [0, 0, 1, 1], [], []>} : vector<16x128xf32>, vector<128x64xf32>, vector<16x64xf32> -> vector<16x64xf32>
    %33 = arith.addf %29, %32 : vector<16x64xf32>
    %c2 = arith.constant 2 : index
    %c0_28 = arith.constant 0 : index
    %c0_29 = arith.constant 0 : index
    %34 = vector.load %arg5[%c2, %c0_28, %c0_29] : memref<3x128x64xf32, #tpu.memory_space<vmem>>, vector<1x128x64xf32>
    %35 = vector.shape_cast %34 : vector<1x128x64xf32> to vector<128x64xf32>
    %cst_30 = arith.constant dense<0.000000e+00> : vector<16x64xf32>
    %36 = tpu.matmul %25, %35, %cst_30 {dimension_numbers = #tpu.dot_dimension_numbers<[1], [0], [0], [1], [0, 0, 1, 1], [], []>} : vector<16x128xf32>, vector<128x64xf32>, vector<16x64xf32> -> vector<16x64xf32>
    %37 = arith.addf %33, %36 : vector<16x64xf32>
    %c0_31 = arith.constant 0 : index
    %c0_32 = arith.constant 0 : index
    %38 = vector.load %arg6[%c0_31, %c0_32] : memref<1x64xf32, #tpu.memory_space<vmem>>, vector<1x64xf32>
    %39 = vector.broadcast %38 : vector<1x64xf32> to vector<16x64xf32>
    %40 = arith.addf %37, %39 : vector<16x64xf32>
    %cst_33 = arith.constant 0.000000e+00 : f32
    %41 = vector.broadcast %cst_33 : f32 to vector<16x64xf32>
    %42 = arith.maximumf %40, %41 : vector<16x64xf32>
    %43 = vector.extract_strided_slice %42 {offsets = [0, 0], sizes = [8, 64], strides = [1, 1]} : vector<16x64xf32> to vector<8x64xf32>
    %44 = vector.extract_strided_slice %42 {offsets = [8, 0], sizes = [8, 64], strides = [1, 1]} : vector<16x64xf32> to vector<8x64xf32>
    %cst_34 = arith.constant 0.000000e+00 : f32
    %45 = vector.broadcast %cst_34 : f32 to vector<16x64xf32>
    %cst_35 = arith.constant 0.000000e+00 : f32
    %46 = vector.broadcast %cst_35 : f32 to vector<1x64xf32>
    %47 = vector.extract_strided_slice %44 {offsets = [0, 0], sizes = [7, 64], strides = [1, 1]} : vector<8x64xf32> to vector<7x64xf32>
    %48 = tpu.concatenate %46, %47, %43 in 0 : vector<1x64xf32>, vector<7x64xf32>, vector<8x64xf32> -> vector<16x64xf32>
    %49 = tpu.concatenate %43, %44 in 0 : vector<8x64xf32>, vector<8x64xf32> -> vector<16x64xf32>
    %50 = vector.extract_strided_slice %43 {offsets = [1, 0], sizes = [7, 64], strides = [1, 1]} : vector<8x64xf32> to vector<7x64xf32>
    %51 = tpu.concatenate %44, %50, %46 in 0 : vector<8x64xf32>, vector<7x64xf32>, vector<1x64xf32> -> vector<16x64xf32>
    %c0_36 = arith.constant 0 : index
    %c0_37 = arith.constant 0 : index
    %c0_38 = arith.constant 0 : index
    %52 = vector.load %arg7[%c0_36, %c0_37, %c0_38] : memref<3x64x64xf32, #tpu.memory_space<vmem>>, vector<1x64x64xf32>
    %53 = vector.shape_cast %52 : vector<1x64x64xf32> to vector<64x64xf32>
    %cst_39 = arith.constant dense<0.000000e+00> : vector<16x64xf32>
    %54 = tpu.matmul %48, %53, %cst_39 {dimension_numbers = #tpu.dot_dimension_numbers<[1], [0], [0], [1], [0, 0, 1, 1], [], []>} : vector<16x64xf32>, vector<64x64xf32>, vector<16x64xf32> -> vector<16x64xf32>
    %55 = arith.addf %45, %54 : vector<16x64xf32>
    %c1_40 = arith.constant 1 : index
    %c0_41 = arith.constant 0 : index
    %c0_42 = arith.constant 0 : index
    %56 = vector.load %arg7[%c1_40, %c0_41, %c0_42] : memref<3x64x64xf32, #tpu.memory_space<vmem>>, vector<1x64x64xf32>
    %57 = vector.shape_cast %56 : vector<1x64x64xf32> to vector<64x64xf32>
    %cst_43 = arith.constant dense<0.000000e+00> : vector<16x64xf32>
    %58 = tpu.matmul %49, %57, %cst_43 {dimension_numbers = #tpu.dot_dimension_numbers<[1], [0], [0], [1], [0, 0, 1, 1], [], []>} : vector<16x64xf32>, vector<64x64xf32>, vector<16x64xf32> -> vector<16x64xf32>
    %59 = arith.addf %55, %58 : vector<16x64xf32>
    %c2_44 = arith.constant 2 : index
    %c0_45 = arith.constant 0 : index
    %c0_46 = arith.constant 0 : index
    %60 = vector.load %arg7[%c2_44, %c0_45, %c0_46] : memref<3x64x64xf32, #tpu.memory_space<vmem>>, vector<1x64x64xf32>
    %61 = vector.shape_cast %60 : vector<1x64x64xf32> to vector<64x64xf32>
    %cst_47 = arith.constant dense<0.000000e+00> : vector<16x64xf32>
    %62 = tpu.matmul %51, %61, %cst_47 {dimension_numbers = #tpu.dot_dimension_numbers<[1], [0], [0], [1], [0, 0, 1, 1], [], []>} : vector<16x64xf32>, vector<64x64xf32>, vector<16x64xf32> -> vector<16x64xf32>
    %63 = arith.addf %59, %62 : vector<16x64xf32>
    %c0_48 = arith.constant 0 : index
    %c0_49 = arith.constant 0 : index
    %64 = vector.load %arg8[%c0_48, %c0_49] : memref<1x64xf32, #tpu.memory_space<vmem>>, vector<1x64xf32>
    %65 = vector.broadcast %64 : vector<1x64xf32> to vector<16x64xf32>
    %66 = arith.addf %63, %65 : vector<16x64xf32>
    %cst_50 = arith.constant 0.000000e+00 : f32
    %67 = vector.broadcast %cst_50 : f32 to vector<16x64xf32>
    %68 = arith.maximumf %66, %67 : vector<16x64xf32>
    %69 = vector.extract_strided_slice %68 {offsets = [0, 0], sizes = [8, 64], strides = [1, 1]} : vector<16x64xf32> to vector<8x64xf32>
    %70 = vector.extract_strided_slice %68 {offsets = [8, 0], sizes = [8, 64], strides = [1, 1]} : vector<16x64xf32> to vector<8x64xf32>
    %71 = tpu.concatenate %69, %70 in 1 : vector<8x64xf32>, vector<8x64xf32> -> vector<8x128xf32>
    %c0_51 = arith.constant 0 : index
    %c0_52 = arith.constant 0 : index
    %c0_53 = arith.constant 0 : index
    %72 = vector.load %arg9[%c0_51, %c0_52, %c0_53] : memref<1x8x128xf32, #tpu.memory_space<vmem>>, vector<1x8x128xf32>
    %73 = vector.shape_cast %72 : vector<1x8x128xf32> to vector<8x128xf32>
    %74 = vector.shape_cast %71 : vector<8x128xf32> to vector<1x8x128xf32>
    tpu.vector_store %arg9[%c0_51, %c0_52, %c0_53], %74 {strides = array<i32>} : memref<1x8x128xf32, #tpu.memory_space<vmem>>, vector<1x8x128xf32>,
    return
  }
  func.func @transform_0(%arg0: i32) -> (i32, i32, i32) {
    %c0_i32 = arith.constant 0 : i32
    %c0_i32_0 = arith.constant 0 : i32
    %c0_i32_1 = arith.constant 0 : i32
    return %arg0, %c0_i32, %c0_i32_0 : i32, i32, i32
  }
  func.func @transform_1(%arg0: i32) -> (i32, i32, i32, i32) {
    %c0_i32 = arith.constant 0 : i32
    %c0_i32_0 = arith.constant 0 : i32
    %c0_i32_1 = arith.constant 0 : i32
    %c0_i32_2 = arith.constant 0 : i32
    return %arg0, %c0_i32, %c0_i32_0, %c0_i32_1 : i32, i32, i32, i32
  }
  func.func @transform_2(%arg0: i32) -> (i32, i32, i32) {
    %c0_i32 = arith.constant 0 : i32
    %c0_i32_0 = arith.constant 0 : i32
    %c0_i32_1 = arith.constant 0 : i32
    %c0_i32_2 = arith.constant 0 : i32
    return %c0_i32, %c0_i32_0, %c0_i32_1 : i32, i32, i32
  }
  func.func @transform_3(%arg0: i32) -> (i32, i32) {
    %c0_i32 = arith.constant 0 : i32
    %c0_i32_0 = arith.constant 0 : i32
    %c0_i32_1 = arith.constant 0 : i32
    return %c0_i32, %c0_i32_0 : i32, i32
  }
  func.func @transform_4(%arg0: i32) -> (i32, i32, i32) {
    %c0_i32 = arith.constant 0 : i32
    %c0_i32_0 = arith.constant 0 : i32
    %c0_i32_1 = arith.constant 0 : i32
    %c0_i32_2 = arith.constant 0 : i32
    return %c0_i32, %c0_i32_0, %c0_i32_1 : i32, i32, i32
  }
  func.func @transform_5(%arg0: i32) -> (i32, i32) {
    %c0_i32 = arith.constant 0 : i32
    %c0_i32_0 = arith.constant 0 : i32
    %c0_i32_1 = arith.constant 0 : i32
    return %c0_i32, %c0_i32_0 : i32, i32
  }
  func.func @transform_6(%arg0: i32) -> (i32, i32, i32) {
    %c0_i32 = arith.constant 0 : i32
    %c0_i32_0 = arith.constant 0 : i32
    %c0_i32_1 = arith.constant 0 : i32
    %c0_i32_2 = arith.constant 0 : i32
    return %c0_i32, %c0_i32_0, %c0_i32_1 : i32, i32, i32
  }
  func.func @transform_7(%arg0: i32) -> (i32, i32) {
    %c0_i32 = arith.constant 0 : i32
    %c0_i32_0 = arith.constant 0 : i32
    %c0_i32_1 = arith.constant 0 : i32
    return %c0_i32, %c0_i32_0 : i32, i32
  }
  func.func @transform_8(%arg0: i32) -> (i32, i32, i32) {
    %c0_i32 = arith.constant 0 : i32
    %c0_i32_0 = arith.constant 0 : i32
    %c0_i32_1 = arith.constant 0 : i32
    return %arg0, %c0_i32, %c0_i32_0 : i32, i32, i32
  }
}

</mosaic_0001>

<bundles_post_ra>
// kernel: tile.23
= control target key start
LH: loop header
LB: loop body
LE: loop exit
PB: predicated region body
PF: predicated region fallthrough
CT: control target
= control target key end

     0   :  { %s28_s0 = inlined_call_operand.vmem [shape: f32[4], index: 0, kind: input, shape index: {}]   ;;  %s29_s1 = inlined_call_operand.vmem [shape: f32[16,4], index: 1, kind: output, shape index: {}]  }
   0x1   :  { %v4_v0 = vld [vmem:[%s28_s0] ss:$0 sm:$0xff] }
   0x2   :  { %5 = vst [vmem:[%s29_s1] sm:$0xff] %v4_v0  ;;  %8 = vst [vmem:[%s29_s1 + $0x8] sm:$0xff] %v4_v0 }

// kernel: tile.24
= control target key start
LH: loop header
LB: loop body
LE: loop exit
PB: predicated region body
PF: predicated region fallthrough
CT: control target
= control target key end

     0   :  { %s131_s10 = smov 60   ;;  %s132_s11 = smov 52   ;;  %vm3_vm0 = vcmask 31744   ;;  %vm9_vm1 = vcmask 523744   ;;  %vm15_vm2 = vcmask 490944   ;;  %vm21_vm3 = vcmask 458144   ;;  %s207_s0 = inlined_call_operand.vmem [shape: f32[16,4], index: 0, kind: input, shape index: {}]   ;;  %s208_s1 = inlined_call_operand.vmem [shape: f32[1,64], index: 1, kind: output, shape index: {}]  }
   0x1   :  { %v101_v0 = vld [vmem:[%s207_s0 + $0xf] sm:$0x1]   ;;  %v103_v1 = vld [vmem:[%s207_s0 + $0xd] sm:$0x1]   ;;  %v102_v2 = vld [vmem:[%s207_s0 + $0xe] sm:$0x1]  }
   0x2   :  { %7 = vrot.lane.b32.xlu0 %v101_v0, %s131_s10  ;;  %19 = vrot.lane.b32.xlu1 %v103_v1, %s132_s11  ;;  %v104_v3 = vld [vmem:[%s207_s0 + $0xc] sm:$0x1]   ;;  %s133_s16 = smov 56   ;;  %s134_s17 = smov 48   ;;  %v105_v4 = vld [vmem:[%s207_s0 + $0xb] sm:$0x1]  }
   0x3   :  { %v106_v5 = vld [vmem:[%s207_s0 + $0xa] sm:$0x1]   ;;  %v2_v6 = vld [vmem:[%s207_s0] sm:$0x1]   ;;  %s135_s24 = smov 44   ;;  %s136_s25 = smov 40  }
   0x4   :  { %4 = vst.msk [vmem:[#allocation0] sm:$0x1] %vm3_vm0, %v2_v6   ;;  %v107_v7 = vld [vmem:[%s207_s0 + $0x9] sm:$0x1]   ;;  %v108_v8 = vld [vmem:[%s207_s0 + $0x8] sm:$0x1]  }
   0x5   :  { %s137_s30 = smov 36   ;;  %s138_s2 = smov 32   ;;  %v109_v9 = vld [vmem:[%s207_s0 + $0x7] sm:$0x1]   ;;  %v110_v10 = vld [vmem:[%s207_s0 + $0x6] sm:$0x1]  }
   0x6   :  { %13 = vrot.lane.b32.xlu0 %v102_v2, %s133_s16  ;;  %25 = vrot.lane.b32.xlu1 %v104_v3, %s134_s17  ;;  %s139_s7 = smov 28   ;;  %s140_s8 = smov 24   ;;  %v111_v11 = vld [vmem:[%s207_s0 + $0x5] sm:$0x1]   ;;  %v112_v12 = vld [vmem:[%s207_s0 + $0x4] sm:$0x1]  }
   0x7   :  { %s141_s13 = smov 20   ;;  %s142_s14 = smov 16   ;;  %v113_v13 = vld [vmem:[%s207_s0 + $0x3] sm:$0x1]   ;;  %v114_v14 = vld [vmem:[%s207_s0 + $0x2] sm:$0x1]  }
   0x8   :  { %s143_s19 = smov 12   ;;  %s144_s20 = smov 8   ;;  %v115_v15 = vld [vmem:[%s207_s0 + $0x1] sm:$0x1]   ;;  %vm27_vm4 = vcmask 425344   ;;  %vm33_vm5 = vcmask 392544  }
   0x9   :  { %s145_s0 = smov 4   ;;  %vm39_vm6 = vcmask 359744   ;;  %vm45_vm7 = vcmask 326944   ;;  %vm51_vm8 = vcmask 294144   ;;  %vm57_vm9 = vcmask 261344  }
   0xa   :  { %31 = vrot.lane.b32.xlu0 %v105_v4, %s135_s24  ;;  %37 = vrot.lane.b32.xlu1 %v106_v5, %s136_s25  ;;  %vm63_vm10 = vcmask 228544   ;;  %vm69_vm11 = vcmask 195744   ;;  %vm75_vm12 = vcmask 162944   ;;  %vm81_vm13 = vcmask 130144  }
   0xb   :  { %vm87_vm14 = vcmask 97344   ;;  %vm93_vm15 = vcmask 64544  }
   0xe   :  { %43 = vrot.lane.b32.xlu0 %v107_v7, %s137_s30  ;;  %49 = vrot.lane.b32.xlu1 %v108_v8, %s138_s2 }
  0x12   :  { %55 = vrot.lane.b32.xlu0 %v109_v9, %s139_s7  ;;  %61 = vrot.lane.b32.xlu1 %v110_v10, %s140_s8 }
  0x16   :  { %67 = vrot.lane.b32.xlu0 %v111_v11, %s141_s13  ;;  %73 = vrot.lane.b32.xlu1 %v112_v12, %s142_s14 }
  0x1a   :  { %79 = vrot.lane.b32.xlu0 %v113_v13, %s143_s19  ;;  %85 = vrot.lane.b32.xlu1 %v114_v14, %s144_s20 }
  0x1e   :  { %91 = vrot.lane.b32.xlu0 %v115_v15, %s145_s0 }
  0x74   :  { %v8_v16 = vpop.permute.xlu0 %7   ;;  %v20_v17 = vpop.permute.xlu1 %19  }
  0x75   :  { %10 = vst.msk [vmem:[#allocation0] sm:$0x1] %vm9_vm1, %v8_v16  }
  0x78   :  { %v14_v18 = vpop.permute.xlu0 %13   ;;  %v26_v19 = vpop.permute.xlu1 %25  }
  0x79   :  { %16 = vst.msk [vmem:[#allocation0] sm:$0x1] %vm15_vm2, %v14_v18  }
  0x7a   :  { %22 = vst.msk [vmem:[#allocation0] sm:$0x1] %vm21_vm3, %v20_v17  }
  0x7b   :  { %28 = vst.msk [vmem:[#allocation0] sm:$0x1] %vm27_vm4, %v26_v19  }
  0x7c   :  { %v32_v20 = vpop.permute.xlu0 %31   ;;  %v38_v21 = vpop.permute.xlu1 %37  }
  0x7d   :  { %34 = vst.msk [vmem:[#allocation0] sm:$0x1] %vm33_vm5, %v32_v20  }
  0x7e   :  { %40 = vst.msk [vmem:[#allocation0] sm:$0x1] %vm39_vm6, %v38_v21  }
  0x80   :  { %v44_v22 = vpop.permute.xlu0 %43   ;;  %v50_v23 = vpop.permute.xlu1 %49  }
  0x81   :  { %46 = vst.msk [vmem:[#allocation0] sm:$0x1] %vm45_vm7, %v44_v22  }
  0x82   :  { %52 = vst.msk [vmem:[#allocation0] sm:$0x1] %vm51_vm8, %v50_v23  }
  0x84   :  { %v56_v24 = vpop.permute.xlu0 %55   ;;  %v62_v25 = vpop.permute.xlu1 %61  }
  0x85   :  { %58 = vst.msk [vmem:[#allocation0] sm:$0x1] %vm57_vm9, %v56_v24  }
  0x86   :  { %64 = vst.msk [vmem:[#allocation0] sm:$0x1] %vm63_vm10, %v62_v25  }
  0x88   :  { %v68_v26 = vpop.permute.xlu0 %67   ;;  %v74_v27 = vpop.permute.xlu1 %73  }
  0x89   :  { %70 = vst.msk [vmem:[#allocation0] sm:$0x1] %vm69_vm11, %v68_v26  }
  0x8a   :  { %76 = vst.msk [vmem:[#allocation0] sm:$0x1] %vm75_vm12, %v74_v27  }
  0x8c   :  { %v80_v28 = vpop.permute.xlu0 %79   ;;  %v86_v29 = vpop.permute.xlu1 %85  }
  0x8d   :  { %82 = vst.msk [vmem:[#allocation0] sm:$0x1] %vm81_vm13, %v80_v28  }
  0x8e   :  { %88 = vst.msk [vmem:[#allocation0] sm:$0x1] %vm87_vm14, %v86_v29  }
  0x90   :  { %v92_v30 = vpop.permute.xlu0 %91  }
  0x91   :  { %94 = vst.msk [vmem:[#allocation0] sm:$0x1] %vm93_vm15, %v92_v30  }
  0x98   :  { %v98_v31 = vld [vmem:[#allocation0] sm:$0x1] }
  0x99   :  { %100 = vst [vmem:[%s208_s1] sm:$0x1] %v98_v31 }

// kernel: unet_up_block_forward.1
= control target key start
LH: loop header
LB: loop body
LE: loop exit
PB: predicated region body
PF: predicated region fallthrough
CT: control target
= control target key end

     0   :  { %s1784_s27 = smov 0   ;;  %s2118_s0 = inlined_call_operand.vmem [shape: f32[2,8,64], index: 0, kind: input, shape index: {}]   ;;  %s2119_s1 = inlined_call_operand.vmem [shape: f32[2,2,8,64], index: 1, kind: input, shape index: {}]   ;;  %s2120_s2 = inlined_call_operand.vmem [shape: f32[2,64,64], index: 2, kind: input, shape index: {}]   ;;  %s2121_s3 = inlined_call_operand.vmem [shape: f32[1,64], index: 3, kind: input, shape index: {}]   ;;  %s2122_s4 = inlined_call_operand.vmem [shape: f32[3,128,64], index: 4, kind: input, shape index: {}]   ;;  %s2123_s5 = inlined_call_operand.vmem [shape: f32[1,64], index: 5, kind: input, shape index: {}]   ;;  %s2124_s6 = inlined_call_operand.vmem [shape: f32[3,64,64], index: 6, kind: input, shape index: {}]   ;;  %s2125_s7 = inlined_call_operand.vmem [shape: f32[1,64], index: 7, kind: input, shape index: {}]   ;;  %s2126_s8 = inlined_call_operand.vmem [shape: f32[2,8,128], index: 8, kind: output, shape index: {}]  }
   0x1 LB: > { %s1154_s28 = sadd.s32 4294967295, %s1733_s27   ;;  %p1158_p0 = scmp.ge.s32.totalorder %s1733_s27, 1  ;;  %s1733_s27 = sphi %s1784_s27, %s18_s27  }
   0x2   : > { %p271_p1 = scmp.lt.s32.totalorder %s1733_s27, 3 }
   0x4   : > { %p272_p2 = pnand %p1158_p0, %p271_p1 }
   0x5   : > { %v323_v0 = vld [vmem:[%s2120_s2] sm:$0xff] (!%p272_p2)  ;;  %v324_v1 = vld [vmem:[%s2120_s2 + $0x8] sm:$0xff] (!%p272_p2)  ;;  %v325_v2 = vld [vmem:[%s2120_s2 + $0x10] sm:$0xff] (!%p272_p2)  ;;  %v1735_v3 = vmov (!%p272_p2), 0.0|0.0   ;;  %vm1736_vm0 = vmmov (!%p272_p2), 0   ;;  %v1737_v6 = vmov (!%p272_p2), 0.0  }
   0x6   : > { %275 = sbr.rel (%p272_p2) target bundleno = 901 (0x385), region = 52  ;;  %1539 = vmatprep.subr.bf16.mxu1 (!%p272_p2), %v1735_v3  ;;  %v1540_v4 = vpack.c.bf16 (!%p272_p2), %v324_v1, %v323_v0  ;;  %v326_v5 = vld [vmem:[%s2120_s2 + $0x18] sm:$0xff] (!%p272_p2)  ;;  %1355 = vmatprep.mubr.msk.f32.mxu1 (!%p272_p2), %vm1736_vm0, %v1737_v6  ;;  %p308_p3 = scmp.lt.s32.totalorder (!%p272_p2), %s1154_s28, 1  ;;  %v327_v8 = vld [vmem:[%s2120_s2 + $0x20] sm:$0xff] (!%p272_p2)  ;;  %v328_v9 = vld [vmem:[%s2120_s2 + $0x28] sm:$0xff] (!%p272_p2)  ;;  %vm337_vm1 = vcmask (!%p272_p2), 523264  }
   0x7   : > { %v1543_v7 = vpack.c.bf16 (!%p272_p2), %v326_v5, %v325_v2  ;;  %v1175_v10 = vld [vmem:[%s2122_s4 + $0x80] sm:$0xff] (!%p272_p2)  ;;  %v1176_v11 = vld [vmem:[%s2122_s4 + $0x88] sm:$0xff] (!%p272_p2)  ;;  %v1177_v13 = vld [vmem:[%s2122_s4 + $0x90] sm:$0xff] (!%p272_p2)  ;;  %v1546_v15 = vpack.c.bf16 (!%p272_p2), %v328_v9, %v327_v8  ;;  %s1738_s15 = smov (!%p272_p2), 64   ;;  %vm506_vm2 = vcmask (!%p272_p2), 1040384   ;;  %vm511_vm4 = vcmask (!%p272_p2), 1046528  }
   0x8   : > { %1541 = vmatpush3.bf16.msra.mxu1 (!%p272_p2), %v1540_v4  ;;  %v1563_v12 = vpack.c.bf16 (!%p272_p2), %v1176_v11, %v1175_v10  ;;  %v1178_v14 = vld [vmem:[%s2122_s4 + $0x98] sm:$0xff] (!%p272_p2)  ;;  %v329_v16 = vld [vmem:[%s2120_s2 + $0x30] sm:$0xff] (!%p272_p2)  ;;  %v1179_v20 = vld [vmem:[%s2122_s4 + $0xa0] sm:$0xff] (!%p272_p2) }
   0x9   : > { %1542 = vmatprep.subr.bf16.mxu1 (!%p272_p2), %v1735_v3  ;;  %v1567_v18 = vpack.c.bf16 (!%p272_p2), %v1178_v14, %v1177_v13  ;;  %v330_v19 = vld [vmem:[%s2120_s2 + $0x38] sm:$0xff] (!%p272_p2)  ;;  %v1180_v21 = vld [vmem:[%s2122_s4 + $0xa8] sm:$0xff] (!%p272_p2)  ;;  %v1165_v25 = vld [vmem:[%s2120_s2 + $0x40] sm:$0xff] (!%p272_p2) }
   0xa   : > { %1564 = vmatprep.subr.bf16.mxu0 (!%p272_p2), %v1563_v12  ;;  %v1549_v23 = vpack.c.bf16 (!%p272_p2), %v330_v19, %v329_v16  ;;  %v1571_v24 = vpack.c.bf16 (!%p272_p2), %v1180_v21, %v1179_v20  ;;  %v1166_v26 = vld [vmem:[%s2120_s2 + $0x48] sm:$0xff] (!%p272_p2)  ;;  %v1181_v27 = vld [vmem:[%s2122_s4 + $0xb0] sm:$0xff] (!%p272_p2)  ;;  %v1182_v28 = vld [vmem:[%s2122_s4 + $0xb8] sm:$0xff] (!%p272_p2) }
   0xb   : > { %1566 = vmatpush3.bf16.msra.mxu0 (!%p272_p2), %v1563_v12  ;;  %v1552_v30 = vpack.c.bf16 (!%p272_p2), %v1166_v26, %v1165_v25  ;;  %v1167_v31 = vld [vmem:[%s2120_s2 + $0x50] sm:$0xff] (!%p272_p2)  ;;  %v1168_v32 = vld [vmem:[%s2120_s2 + $0x58] sm:$0xff] (!%p272_p2)  ;;  %v1575_v33 = vpack.c.bf16 (!%p272_p2), %v1182_v28, %v1181_v27  ;;  %v1169_v35 = vld [vmem:[%s2120_s2 + $0x60] sm:$0xff] (!%p272_p2) }
   0xc   : > { %1544 = vmatpush3.bf16.msra.mxu1 (!%p272_p2), %v1543_v7  ;;  %1568 = vmatprep.subr.bf16.mxu0 (!%p272_p2), %v1567_v18  ;;  %v1555_v34 = vpack.c.bf16 (!%p272_p2), %v1168_v32, %v1167_v31  ;;  %v1170_v36 = vld [vmem:[%s2120_s2 + $0x68] sm:$0xff] (!%p272_p2)  ;;  %v1171_v38 = vld [vmem:[%s2120_s2 + $0x70] sm:$0xff] (!%p272_p2)  ;;  %v1172_v39 = vld [vmem:[%s2120_s2 + $0x78] sm:$0xff] (!%p272_p2) }
   0xd   : > { %s2128_s28 = smov (!%p308_p3, %s1154_s28), 1  ;;  %1545 = vmatprep.subr.bf16.mxu1 %v1735_v3  ;;  %v1558_v37 = vpack.c.bf16 %v1170_v36, %v1169_v35  ;;  %v1561_v40 = vpack.c.bf16 %v1172_v39, %v1171_v38  ;;  %v1183_v41 = vld [vmem:[%s2122_s4 + $0xc0] sm:$0xff]  ;;  %v1184_v42 = vld [vmem:[%s2122_s4 + $0xc8] sm:$0xff]  ;;  %v1185_v44 = vld [vmem:[%s2122_s4 + $0xd0] sm:$0xff] }
   0xe   : > { %s1236_s19 = sshll.u32 %s2128_s28, 4  ;;  %s1159_s20 = sshll.u32 %s2128_s28, 3  ;;  %v1579_v43 = vpack.c.bf16 %v1184_v42, %v1183_v41  ;;  %v1186_v45 = vld [vmem:[%s2122_s4 + $0xd8] sm:$0xff]  ;;  %v1187_v46 = vld [vmem:[%s2122_s4 + $0xe0] sm:$0xff]  ;;  %v1188_v48 = vld [vmem:[%s2122_s4 + $0xe8] sm:$0xff] }
   0xf   : > { %s316_s26 = scalar_lea.vmem %s2119_s1, %s1236_s19  ;;  %s311_s23 = scalar_lea.vmem %s2118_s0, %s1159_s20  ;;  %1570 = vmatpush3.bf16.msra.mxu0 %v1567_v18  ;;  %v1583_v47 = vpack.c.bf16 %v1186_v45, %v1185_v44  ;;  %v1587_v49 = vpack.c.bf16 %v1188_v48, %v1187_v46  ;;  %v1189_v50 = vld [vmem:[%s2122_s4 + $0xf0] sm:$0xff]  ;;  %v1190_v51 = vld [vmem:[%s2122_s4 + $0xf8] sm:$0xff]  ;;  %v513_v53 = vld [vmem:[%s2122_s4] sm:$0xff] }
  0x10   : > { %v490_v17 = vld [vmem:[%s316_s26] sm:$0xff]  ;;  %v1174_v22 = vld [vmem:[%s316_s26 + $0x8] sm:$0xff]  ;;  %1547 = vmatpush3.bf16.msra.mxu1 %v1546_v15  ;;  %1572 = vmatprep.subr.bf16.mxu0 %v1571_v24  ;;  %v1591_v52 = vpack.c.bf16 %v1190_v51, %v1189_v50  ;;  %v1213_v58 = vld [vmem:[%s2124_s6 + $0x50] sm:$0xff]  ;;  %s320_s17 = scalar_lea.vmem %s2126_s8, %s1159_s20 }
  0x11   : > { %494 = vrot.lane.b32.xlu0 %v490_v17, %s1738_s15  ;;  %1548 = vmatprep.subr.bf16.mxu1 %v1735_v3  ;;  %v321_v29 = vld [vmem:[%s311_s23] sm:$0xff]  ;;  %v514_v54 = vld [vmem:[%s2122_s4 + $0x8] sm:$0xff]  ;;  %v1214_v60 = vld [vmem:[%s2124_s6 + $0x58] sm:$0xff] }
  0x12   : > { %v1595_v55 = vpack.c.bf16 %v514_v54, %v513_v53  ;;  %v1211_v56 = vld [vmem:[%s2124_s6 + $0x40] sm:$0xff]  ;;  %v1212_v57 = vld [vmem:[%s2124_s6 + $0x48] sm:$0xff]  ;;  %v1663_v61 = vpack.c.bf16 %v1214_v60, %v1213_v58  ;;  %v515_v7 = vld [vmem:[%s2122_s4 + $0x10] sm:$0xff] }
  0x13   : > { %1574 = vmatpush3.bf16.msra.mxu0 %v1571_v24  ;;  %v1659_v59 = vpack.c.bf16 %v1212_v57, %v1211_v56  ;;  %v1215_v62 = vld [vmem:[%s2124_s6 + $0x60] sm:$0xff]  ;;  %v1216_v63 = vld [vmem:[%s2124_s6 + $0x68] sm:$0xff]  ;;  %v516_v8 = vld [vmem:[%s2122_s4 + $0x18] sm:$0xff] }
  0x14   : > { %1550 = vmatpush3.bf16.msra.mxu1 %v1549_v23  ;;  %1576 = vmatprep.subr.bf16.mxu0 %v1575_v33  ;;  %v1667_v0 = vpack.c.bf16 %v1216_v63, %v1215_v62  ;;  %v1163_v1 = vld [vmem:[%s2121_s3] ss:$0 sm:$0xff]  ;;  %v1599_v13 = vpack.c.bf16 %v516_v8, %v515_v7  ;;  %vm1191_vm3 = vmneg %vm506_vm2  ;;  %v518_v16 = vld [vmem:[%s2122_s4 + $0x28] sm:$0xff] }
  0x15   : > { %499 = vrot.lane.b32.xlu0 %v1174_v22, %s1738_s15  ;;  %1551 = vmatprep.subr.bf16.mxu1 %v1735_v3  ;;  %v517_v15 = vld [vmem:[%s2122_s4 + $0x20] sm:$0xff]  ;;  %v519_v19 = vld [vmem:[%s2122_s4 + $0x30] sm:$0xff]  ;;  %v520_v20 = vld [vmem:[%s2122_s4 + $0x38] sm:$0xff] }
  0x16   : > { %v1603_v18 = vpack.c.bf16 %v518_v16, %v517_v15  ;;  %v1607_v21 = vpack.c.bf16 %v520_v20, %v519_v19  ;;  %v521_v22 = vld [vmem:[%s2122_s4 + $0x40] sm:$0xff]  ;;  %v522_v23 = vld [vmem:[%s2122_s4 + $0x48] sm:$0xff]  ;;  %v523_v25 = vld [vmem:[%s2122_s4 + $0x50] sm:$0xff] }
  0x17   : > { %1356 = vmatmul.mubr.msk.f32.vlgmr.msra.gmra.mrb[0].mxu1 %vm337_vm1, %v321_v29  ;;  %1578 = vmatpush3.bf16.msra.mxu0 %v1575_v33  ;;  %v1611_v24 = vpack.c.bf16 %v522_v23, %v521_v22  ;;  %v524_v26 = vld [vmem:[%s2122_s4 + $0x58] sm:$0xff]  ;;  %v525_v28 = vld [vmem:[%s2122_s4 + $0x60] sm:$0xff]  ;;  %v527_v31 = vld [vmem:[%s2122_s4 + $0x70] sm:$0xff] }
  0x18   : > { %1553 = vmatpush3.bf16.msra.mxu1 %v1552_v30  ;;  %1374 = vmatprep.mubr.msk.f32.mxu1 %vm1736_vm0, %v1737_v6  ;;  %v1615_v27 = vpack.c.bf16 %v524_v26, %v523_v25  ;;  %v528_v32 = vld [vmem:[%s2122_s4 + $0x78] sm:$0xff]  ;;  %v1194_v35 = vld [vmem:[%s2122_s4 + $0x108] sm:$0xff]  ;;  %v1201_v46 = vld [vmem:[%s2122_s4 + $0x140] sm:$0xff] }
  0x19   : > { %1554 = vmatprep.subr.bf16.mxu1 %v1735_v3  ;;  %1580 = vmatprep.subr.bf16.mxu0 %v1579_v43  ;;  %v1623_v33 = vpack.c.bf16 %v528_v32, %v527_v31  ;;  %v1196_v38 = vld [vmem:[%s2122_s4 + $0x118] sm:$0xff]  ;;  %v1198_v41 = vld [vmem:[%s2122_s4 + $0x128] sm:$0xff]  ;;  %v809_v62 = vld [vmem:[%s2124_s6] sm:$0xff] }
  0x1a   : > { %v1200_v44 = vld [vmem:[%s2122_s4 + $0x138] sm:$0xff]  ;;  %v1206_v53 = vld [vmem:[%s2122_s4 + $0x168] sm:$0xff]  ;;  %v815_v16 = vld [vmem:[%s2124_s6 + $0x30] sm:$0xff] }
  0x1b   : > { %1582 = vmatpush3.bf16.msra.mxu0 %v1579_v43  ;;  %v1199_v43 = vld [vmem:[%s2122_s4 + $0x130] sm:$0xff]  ;;  %v1204_v50 = vld [vmem:[%s2122_s4 + $0x158] sm:$0xff]  ;;  %v810_v63 = vld [vmem:[%s2124_s6 + $0x8] sm:$0xff] }
  0x1c   : > { %1556 = vmatpush3.bf16.msra.mxu1 %v1555_v34  ;;  %1584 = vmatprep.subr.bf16.mxu0 %v1583_v47  ;;  %v1193_v34 = vld [vmem:[%s2122_s4 + $0x100] sm:$0xff]  ;;  %v1639_v45 = vpack.c.bf16 %v1200_v44, %v1199_v43  ;;  %v1208_v56 = vld [vmem:[%s2122_s4 + $0x178] sm:$0xff]  ;;  %v1224_v20 = vld [vmem:[%s2124_s6 + $0x88] sm:$0xff] }
  0x1d   : > { %1557 = vmatprep.subr.bf16.mxu1 %v1735_v3  ;;  %v1627_v36 = vpack.c.bf16 %v1194_v35, %v1193_v34  ;;  %v1218_v60 = vld [vmem:[%s2124_s6 + $0x78] sm:$0xff]  ;;  %v1223_v19 = vld [vmem:[%s2124_s6 + $0x80] sm:$0xff]  ;;  %v1225_v22 = vld [vmem:[%s2124_s6 + $0x90] sm:$0xff] }
  0x1e   : > { %v812_v7 = vld [vmem:[%s2124_s6 + $0x18] sm:$0xff]  ;;  %v1227_v25 = vld [vmem:[%s2124_s6 + $0xa0] sm:$0xff]  ;;  %v1228_v26 = vld [vmem:[%s2124_s6 + $0xa8] sm:$0xff] }
  0x1f   : > { %1586 = vmatpush3.bf16.msra.mxu0 %v1583_v47  ;;  %v1202_v47 = vld [vmem:[%s2122_s4 + $0x148] sm:$0xff]  ;;  %v1226_v23 = vld [vmem:[%s2124_s6 + $0x98] sm:$0xff] }
  0x20   : > { %1559 = vmatpush3.bf16.msra.mxu1 %v1558_v37  ;;  %1588 = vmatprep.subr.bf16.mxu0 %v1587_v49  ;;  %v1195_v37 = vld [vmem:[%s2122_s4 + $0x110] sm:$0xff]  ;;  %v1643_v48 = vpack.c.bf16 %v1202_v47, %v1201_v46 }
  0x21   : > { %1560 = vmatprep.subr.bf16.mxu1 %v1735_v3  ;;  %v1631_v39 = vpack.c.bf16 %v1196_v38, %v1195_v37 }
  0x23   : > { %1590 = vmatpush3.bf16.msra.mxu0 %v1587_v49  ;;  %v1203_v49 = vld [vmem:[%s2122_s4 + $0x150] sm:$0xff] }
  0x24   : > { %1562 = vmatpush3.bf16.msra.mxu1 %v1561_v40  ;;  %1592 = vmatprep.subr.bf16.mxu0 %v1591_v52  ;;  %v1197_v40 = vld [vmem:[%s2122_s4 + $0x120] sm:$0xff]  ;;  %v1647_v51 = vpack.c.bf16 %v1204_v50, %v1203_v49 }
  0x25   : > { %1660 = vmatprep.subr.bf16.mxu1 %v1659_v59  ;;  %v1635_v42 = vpack.c.bf16 %v1198_v41, %v1197_v40 }
  0x27   : > { %1375 = vmatmul.mubr.msk.f32.vlgmr.msra.gmra.mrb[2].mxu1 %vm337_vm1, %v321_v29  ;;  %1594 = vmatpush3.bf16.msra.mxu0 %v1591_v52  ;;  %v526_v29 = vld [vmem:[%s2122_s4 + $0x68] sm:$0xff]  ;;  %v1205_v52 = vld [vmem:[%s2122_s4 + $0x160] sm:$0xff] }
  0x28   : > { %1596 = vmatprep.subr.bf16.mxu0 %v1595_v55  ;;  %1662 = vmatpush3.bf16.msra.mxu1 %v1659_v59  ;;  %v1619_v30 = vpack.c.bf16 %v526_v29, %v525_v28  ;;  %v1651_v54 = vpack.c.bf16 %v1206_v53, %v1205_v52  ;;  %v1217_v59 = vld [vmem:[%s2124_s6 + $0x70] sm:$0xff]  ;;  %v1230_v29 = vld [vmem:[%s2124_s6 + $0xb8] sm:$0xff] }
  0x29   : > { %1664 = vmatprep.subr.bf16.mxu1 %v1663_v61  ;;  %v1229_v28 = vld [vmem:[%s2124_s6 + $0xb0] sm:$0xff] }
  0x2c   : > { %1666 = vmatpush3.bf16.msra.mxu1 %v1663_v61  ;;  %v1671_v61 = vpack.c.bf16 %v1218_v60, %v1217_v59 }
  0x2d   : > { %1668 = vmatprep.subr.bf16.mxu1 %v1667_v0 }
  0x30   : > { %1670 = vmatpush3.bf16.msra.mxu1 %v1667_v0  ;;  %v1675_v0 = vpack.c.bf16 %v810_v63, %v809_v62 }
  0x31   : > { %1672 = vmatprep.subr.bf16.mxu1 %v1671_v61 }
  0x34   : > { %1674 = vmatpush3.bf16.msra.mxu1 %v1671_v61 }
  0x35   : > { %1676 = vmatprep.subr.bf16.mxu1 %v1675_v0 }
  0x83   : > { %v495_v3 = vpop.permute.xlu0 %494 }
  0x87   : > { %v500_v10 = vpop.permute.xlu0 %499 }
  0xea   : > { %v407_v2 = vpop.f32.mrb[0].mxu1 }
  0xeb   : > { %v408_v4 = vadd.f32 %v1163_v1, %v407_v2  ;;  %v1357_v5 = vpop.f32.mrb[1].mxu1 }
  0xed   : > { %v1942_v6 = vsel %vm337_vm1, %v408_v4, %v495_v3 }
  0xee   : > { %1409 = vmatprep.mubr.f32.mxu0 %v1942_v6  ;;  %v509_v58 = vrot.slane %v1942_v6, 1 }
  0xfa   : > { %v486_v9 = vpop.f32.mrb[2].mxu1 }
  0xfb   : > { %v487_v11 = vadd.f32 %v1163_v1, %v486_v9  ;;  %v1376_v12 = vpop.f32.mrb[3].mxu1  ;;  %v1210_v1 = vld [vmem:[%s2123_s5] ss:$0 sm:$0xff] }
  0xfc   : > { %v813_v12 = vld [vmem:[%s2124_s6 + $0x20] sm:$0xff] }
  0xfd   : > { %v502_v14 = vsel %vm337_vm1, %v487_v11, %v500_v10 }
  0xfe   : > { %v504_v17 = vrot.slane %v502_v14, 7  ;;  %1410 = vmatmul.mubr.f32.vlgmr.msra.gmra.mrb[0].mxu0 %v502_v14 }
  0xff   : > { %1598 = vmatpush3.bf16.msra.mxu0 %v1595_v55  ;;  %v1207_v55 = vld [vmem:[%s2122_s4 + $0x170] sm:$0xff] }
 0x100   : > { %1444 = vmatprep.mubr.msk.f32.mxu0 %vm1191_vm3, %v504_v17  ;;  %1600 = vmatprep.subr.bf16.mxu0 %v1599_v13  ;;  %v1655_v57 = vpack.c.bf16 %v1208_v56, %v1207_v55  ;;  %v816_v17 = vld [vmem:[%s2124_s6 + $0x38] sm:$0xff] }
 0x103   : > { %1602 = vmatpush3.bf16.msra.mxu0 %v1599_v13  ;;  %v814_v13 = vld [vmem:[%s2124_s6 + $0x28] sm:$0xff] }
 0x104   : > { %1604 = vmatprep.subr.bf16.mxu0 %v1603_v18  ;;  %v1683_v15 = vpack.c.bf16 %v814_v13, %v813_v12 }
 0x107   : > { %1606 = vmatpush3.bf16.msra.mxu0 %v1603_v18  ;;  %v1687_v18 = vpack.c.bf16 %v816_v17, %v815_v16 }
 0x108   : > { %1608 = vmatprep.subr.bf16.mxu0 %v1607_v21 }
 0x10b   : > { %1610 = vmatpush3.bf16.msra.mxu0 %v1607_v21  ;;  %v1691_v21 = vpack.c.bf16 %v1224_v20, %v1223_v19 }
 0x10c   : > { %1612 = vmatprep.subr.bf16.mxu0 %v1611_v24 }
 0x10f   : > { %1614 = vmatpush3.bf16.msra.mxu0 %v1611_v24  ;;  %v1695_v24 = vpack.c.bf16 %v1226_v23, %v1225_v22 }
 0x110   : > { %1616 = vmatprep.subr.bf16.mxu0 %v1615_v27 }
 0x113   : > { %1618 = vmatpush3.bf16.msra.mxu0 %v1615_v27  ;;  %v1699_v27 = vpack.c.bf16 %v1228_v26, %v1227_v25 }
 0x114   : > { %1620 = vmatprep.subr.bf16.mxu0 %v1619_v30 }
 0x117   : > { %1622 = vmatpush3.bf16.msra.mxu0 %v1619_v30  ;;  %v1703_v30 = vpack.c.bf16 %v1230_v29, %v1229_v28 }
 0x118   : > { %1624 = vmatprep.subr.bf16.mxu0 %v1623_v33 }
 0x11b   : > { %1626 = vmatpush3.bf16.msra.mxu0 %v1623_v33  ;;  %v1233_v33 = vld [vmem:[%s2125_s7] ss:$0 sm:$0xff] }
 0x11c   : > { %1628 = vmatprep.subr.bf16.mxu0 %v1627_v36 }
 0x11e   : > { %1445 = vmatmul.mubr.f32.vlgmr.msra.gmra.mrb[0].mxu0 %v1942_v6  ;;  %v811_v6 = vld [vmem:[%s2124_s6 + $0x10] sm:$0xff] }
 0x11f   : > { %1630 = vmatpush3.bf16.msra.mxu0 %v1627_v36  ;;  %1479 = vmatprep.mubr.f32.mxu0 %v502_v14  ;;  %v1679_v11 = vpack.c.bf16 %v812_v7, %v811_v6 }
 0x120   : > { %1632 = vmatprep.subr.bf16.mxu0 %v1631_v39 }
 0x123   : > { %1634 = vmatpush3.bf16.msra.mxu0 %v1631_v39 }
 0x124   : > { %1636 = vmatprep.subr.bf16.mxu0 %v1635_v42 }
 0x127   : > { %1638 = vmatpush3.bf16.msra.mxu0 %v1635_v42 }
 0x128   : > { %1640 = vmatprep.subr.bf16.mxu0 %v1639_v45 }
 0x12b   : > { %1642 = vmatpush3.bf16.msra.mxu0 %v1639_v45 }
 0x12c   : > { %1644 = vmatprep.subr.bf16.mxu0 %v1643_v48 }
 0x12f   : > { %1646 = vmatpush3.bf16.msra.mxu0 %v1643_v48 }
 0x130   : > { %1648 = vmatprep.subr.bf16.mxu0 %v1647_v51 }
 0x133   : > { %1650 = vmatpush3.bf16.msra.mxu0 %v1647_v51 }
 0x134   : > { %1652 = vmatprep.subr.bf16.mxu0 %v1651_v54 }
 0x137   : > { %1654 = vmatpush3.bf16.msra.mxu0 %v1651_v54 }
 0x138   : > { %1656 = vmatprep.subr.bf16.mxu0 %v1655_v57 }
 0x13b   : > { %1658 = vmatpush3.bf16.msra.mxu0 %v1655_v57 }
 0x13e   : > { %1480 = vmatmul.mubr.msk.f32.vlgmr.msra.gmra.mrb[0].mxu0 %vm511_vm4, %v509_v58 }
 0x211   : > { %v1481_v2 = vpop.f32.mrb[0].mxu0 }
 0x212   : > { %v798_v3 = vadd.f32 %v1481_v2, %v1210_v1  ;;  %v779_v4 = vpop.f32.mrb[1].mxu0 }
 0x213   : > { %v797_v5 = vadd.f32 %v1210_v1, %v779_v4 }
 0x214   : > { %v800_v8 = vmax.f32 %v798_v3, 0.0 }
 0x215   : > { %v799_v9 = vmax.f32 %v797_v5, 0.0 }
 0x216   : > { %v802_v10 = vrot.slane %v800_v8, 7 }
 0x217   : > { %1498 = vmatprep.mubr.msk.f32.mxu1 %vm337_vm1, %v799_v9  ;;  %v806_v31 = vrot.slane %v799_v9, 1 }
 0x218   : > { %1499 = vmatmul.mubr.msk.f32.vlgmr.msra.gmra.mrb[4].mxu1 %vm337_vm1, %v800_v8  ;;  %v804_v14 = vsel %vm506_vm2, 0.0, %v802_v10 }
 0x219   : > { %1678 = vmatpush3.bf16.msra.mxu1 %v1675_v0  ;;  %1517 = vmatprep.mubr.msk.f32.mxu1 %vm337_vm1, %v804_v14  ;;  %v808_v32 = vsel %vm511_vm4, %v806_v31, 0.0 }
 0x21a   : > { %1680 = vmatprep.subr.bf16.mxu1 %v1679_v11 }
 0x21d   : > { %1682 = vmatpush3.bf16.msra.mxu1 %v1679_v11 }
 0x21e   : > { %1684 = vmatprep.subr.bf16.mxu1 %v1683_v15 }
 0x221   : > { %1686 = vmatpush3.bf16.msra.mxu1 %v1683_v15 }
 0x222   : > { %1688 = vmatprep.subr.bf16.mxu1 %v1687_v18 }
 0x225   : > { %1690 = vmatpush3.bf16.msra.mxu1 %v1687_v18 }
 0x226   : > { %1692 = vmatprep.subr.bf16.mxu1 %v1691_v21 }
 0x228   : > { %1518 = vmatmul.mubr.msk.f32.vlgmr.msra.gmra.mrb[4].mxu1 %vm337_vm1, %v799_v9 }
 0x229   : > { %1694 = vmatpush3.bf16.msra.mxu1 %v1691_v21  ;;  %1536 = vmatprep.mubr.msk.f32.mxu1 %vm337_vm1, %v800_v8 }
 0x22a   : > { %1696 = vmatprep.subr.bf16.mxu1 %v1695_v24 }
 0x22d   : > { %1698 = vmatpush3.bf16.msra.mxu1 %v1695_v24 }
 0x22e   : > { %1700 = vmatprep.subr.bf16.mxu1 %v1699_v27 }
 0x231   : > { %1702 = vmatpush3.bf16.msra.mxu1 %v1699_v27 }
 0x232   : > { %1704 = vmatprep.subr.bf16.mxu1 %v1703_v30 }
 0x235   : > { %1706 = vmatpush3.bf16.msra.mxu1 %v1703_v30 }
 0x238   : > { %1537 = vmatmul.mubr.msk.f32.vlgmr.msra.gmra.mrb[4].mxu1 %vm337_vm1, %v808_v32 }
 0x30b   : > { %v1538_v34 = vpop.f32.mrb[4].mxu1 }
 0x30c   : > { %v1080_v35 = vadd.f32 %v1538_v34, %v1233_v33  ;;  %v1061_v36 = vpop.f32.mrb[5].mxu1 }
 0x30d   : > { %v1079_v37 = vadd.f32 %v1233_v33, %v1061_v36 }
 0x30e   : > { %v1082_v38 = vmax.f32 %v1080_v35, 0.0 }
 0x30f   : > { %v1081_v39 = vmax.f32 %v1079_v37, 0.0 }
 0x310   : > { %1084 = vrot.lane.b32.xlu1 %v1082_v38, %s1738_s15 }
 0x382   : > { %v1085_v40 = vpop.permute.xlu1 %1084 }
 0x383   : > { %v1087_v41 = vsel %vm337_vm1, %v1081_v39, %v1085_v40 }
 0x384   : > { %1088 = vst [vmem:[%s320_s17] sm:$0xff] %v1087_v41 }
 0x385 PF: > { %s18_s27 = sadd.s32 1, %s1733_s27  }
 0x386   : > { %p15_p4 = scmp.ge.s32.totalorder %s18_s27, 4  }
 0x388   :  { %17 = sbr.rel (!%p15_p4) target bundleno = 1 (0x1), region = 91 }

</bundles_post_ra>
